<compile_context>
chip_gen: v6e
topology: v6e:2x2x1
jax: 0.10.0
libtpu: 0.0.40
codegen_flags: <defaults>
</compile_context>

<pallas_src>
import math

import jax
import jax.numpy as jnp
from jax.experimental import pallas as pl
from jax.experimental.pallas import tpu as pltpu

LANE = 128


def _round_up(x, m):
    return ((x + m - 1) // m) * m


# ----------------------------------------------------------------------------- kernel
def ae_kernel(x_ref, w1_ref, b1_ref, w2_ref, b2_ref,
              w3_ref, b3_ref, w4_ref, b4_ref,
              enc_ref, dec_ref):
    """One batch tile of the fused AE forward pass.

    x_ref:  (TB, in)        f32   (cast to bf16 in-kernel, rides VPU slack)
    w1_ref: (in, h1p)       bf16  | resident in VMEM across the whole grid
    w2_ref: (h1p, h2)       bf16  |
    w3_ref: (h2, h1p)       bf16  |
    w4_ref: (h1p, in_pad)   bf16  |
    b*_ref: (1, N)          f32
    enc_ref: (TB, h2)       bf16  (true width, no padded slab)
    dec_ref: (TB, in_pad)   bf16  (lane-dense store; sliced back outside)
    """
    x = x_ref[...].astype(jnp.bfloat16)

    # ---- encoder: Linear -> ReLU -> Linear ----
    h1 = jnp.dot(x, w1_ref[...], preferred_element_type=jnp.float32)
    h1 = jnp.maximum(h1 + b1_ref[...], 0.0).astype(jnp.bfloat16)
    enc = jnp.dot(h1, w2_ref[...], preferred_element_type=jnp.float32) + b2_ref[...]
    enc_ref[...] = enc.astype(enc_ref.dtype)

    # ---- decoder: ReLU -> Linear -> ReLU -> Linear ----
    d0 = jnp.maximum(enc, 0.0).astype(jnp.bfloat16)
    d1 = jnp.dot(d0, w3_ref[...], preferred_element_type=jnp.float32)
    d1 = jnp.maximum(d1 + b3_ref[...], 0.0).astype(jnp.bfloat16)
    dec = jnp.dot(d1, w4_ref[...], preferred_element_type=jnp.float32) + b4_ref[...]
    dec_ref[...] = dec.astype(dec_ref.dtype)


# ----------------------------------------------------------------------------- sizing
def _tile_bytes(rows, cols, itemsize):
    """VMEM footprint of a (rows, cols) buffer after (8|16, 128) tile padding."""
    sub = 8 if itemsize >= 4 else 16
    return _round_up(max(rows, 1), sub) * _round_up(max(cols, 1), LANE) * itemsize


def _vmem_bytes_estimate(tb, in_dim, in_pad, h1p, h2):
    bf, f4 = 2, 4
    # Resident weights/biases use a constant block index but are still
    # double-buffered by the pipeline -> count them twice.
    w = (_tile_bytes(in_dim, h1p, bf) + _tile_bytes(h1p, h2, bf)
         + _tile_bytes(h2, h1p, bf) + _tile_bytes(h1p, in_pad, bf))
    b = (2 * _tile_bytes(1, h1p, f4) + _tile_bytes(1, h2, f4)
         + _tile_bytes(1, in_pad, f4))
    resident = 2 * (w + b)
    x_io = 2 * _tile_bytes(tb, in_dim, f4)                                 # f32 in
    out_io = 2 * (_tile_bytes(tb, h2, bf) + _tile_bytes(tb, in_pad, bf))   # bf16 out
    live = (2 * _tile_bytes(tb, h1p, f4) + _tile_bytes(tb, h2, f4)
            + _tile_bytes(tb, in_pad, f4))                                 # f32 temps
    return resident + x_io + out_io + live


def _vmem_capacity_bytes():
    try:
        cap = int(getattr(pltpu.get_tpu_info(), "vmem_capacity_bytes", 0))
        if cap > 0:
            return cap
    except Exception:
        pass
    try:
        kind = jax.devices()[0].device_kind.lower()
        if "v7" in kind:
            return 64 << 20
        if "v5" in kind or "v6" in kind:
            return 128 << 20
    except Exception:
        pass
    return 64 << 20  # conservative (v7x-sized)


# ----------------------------------------------------------------------------- wrapper
def ae_forward(x, prep, *, tb_max=1024):
    """x: (B, input_dim) f32. prep: output of prepare_ae_params. Returns bf16 (enc, dec)."""
    B, in_dim = x.shape
    assert in_dim == prep["in"]
    h1p, h2, in_pad = prep["h1p"], prep["h2"], prep["in_pad"]

    cap = _vmem_capacity_bytes()
    budget = cap - (8 << 20)  # headroom for compiler internal scratch / semaphores

    # Batch tile: multiple of 8 sublanes, shrunk to fit the VMEM budget.
    tb = min(tb_max, max(8, _round_up(B, 8)))
    while tb > 8 and _vmem_bytes_estimate(tb, in_dim, in_pad, h1p, h2) > budget:
        tb = max(8, _round_up(tb // 2, 8))
    # v7x megacore: keep >= 2 grid steps when the batch allows it.
    if B >= 16 and pl.cdiv(B, tb) < 2:
        tb = max(8, _round_up(pl.cdiv(B, 2), 8))

    grid = (pl.cdiv(B, tb),)

    # TODO(synk): if resident weights alone exceed the VMEM budget (input_dim ~2k on
    # v7x, ~4k on v5e/v6e with double-buffered weights), add a K-split "arbitrary"
    # grid axis with an f32 accumulator instead of shrinking tb.

    weights = (prep["w1t"], prep["b1"], prep["w2t"], prep["b2"],
               prep["w3t"], prep["b3"], prep["w4t"], prep["b4"])

    def resident(a):  # constant block index -> fetched once, stays in VMEM
        return pl.BlockSpec(a.shape, lambda i: (0, 0))

    vmem_limit = int(min(budget,
                         max(32 << 20,
                             2 * _vmem_bytes_estimate(tb, in_dim, in_pad, h1p, h2))))

    enc, dec_p = pl.pallas_call(
        ae_kernel,
        grid=grid,
        in_specs=[pl.BlockSpec((tb, in_dim), lambda i: (i, 0))]
                 + [resident(w) for w in weights],
        out_specs=(pl.BlockSpec((tb, h2), lambda i: (i, 0)),
                   pl.BlockSpec((tb, in_pad), lambda i: (i, 0))),
        out_shape=(jax.ShapeDtypeStruct((B, h2), jnp.bfloat16),
                   jax.ShapeDtypeStruct((B, in_pad), jnp.bfloat16)),
        compiler_params=pltpu.CompilerParams(
            dimension_semantics=("parallel",),
            vmem_limit_bytes=vmem_limit),
    )(x, *weights)

    dec = dec_p if in_pad == in_dim else dec_p[:, :in_dim]
    return enc, dec


# ----------------------------------------------------------------------------- params
def init_ae_params(key, input_dim):
    """PyTorch nn.Linear-style init (uniform +/- 1/sqrt(fan_in)); weights (out, in)."""
    nearest_power_of_2 = 2 ** round(math.log2(input_dim))
    h1 = nearest_power_of_2 // 2
    h2 = nearest_power_of_2 // 4

    def linear(k, fan_in, fan_out):
        kw, kb = jax.random.split(k)
        bound = 1.0 / math.sqrt(fan_in)
        w = jax.random.uniform(kw, (fan_out, fan_in), jnp.float32, -bound, bound)
        b = jax.random.uniform(kb, (fan_out,), jnp.float32, -bound, bound)
        return w, b

    k1, k2, k3, k4 = jax.random.split(key, 4)
    return {
        "w1": linear(k1, input_dim, h1),   # encoder Linear 1
        "w2": linear(k2, h1, h2),          # encoder Linear 2
        "w3": linear(k3, h2, h1),          # decoder Linear 1
        "w4": linear(k4, h1, input_dim),   # decoder Linear 2
        "dims": (input_dim, h1, h2),
    }


def prepare_ae_params(params):
    """Transpose weights to (in, out), zero-pad h1 (and w4/b4 output columns to a
    128 multiple so the dec store is lane-dense), cast weights to bf16 (biases f32).
    Zero padding is exact: padded units compute to 0 and contribute nothing."""
    input_dim, h1, h2 = params["dims"]
    h1p = _round_up(h1, LANE)
    in_pad = _round_up(input_dim, LANE)

    def pack(wb, k_dim, n_dim):
        w, b = wb
        wt = jnp.zeros((k_dim, n_dim), jnp.float32).at[:w.shape[1], :w.shape[0]].set(w.T)
        br = jnp.zeros((1, n_dim), jnp.float32).at[0, :b.shape[0]].set(b)
        return wt.astype(jnp.bfloat16), br

    w1t, b1 = pack(params["w1"], input_dim, h1p)   # K = in_dim (x stays unpadded)
    w2t, b2 = pack(params["w2"], h1p, h2)          # enc written at true width h2
    w3t, b3 = pack(params["w3"], h2, h1p)
    w4t, b4 = pack(params["w4"], h1p, in_pad)      # N padded -> lane-dense dec store
    return {"w1t": w1t, "b1": b1, "w2t": w2t, "b2": b2,
            "w3t": w3t, "b3": b3, "w4t": w4t, "b4": b4,
            "h1": h1, "h1p": h1p, "h2": h2, "in": input_dim, "in_pad": in_pad}


# ----------------------------------------------------------------------------- reference
def ae_reference(x, prep):
    """Plain-JAX forward with the same bf16 activation/weight quantization."""
    hi = jax.lax.Precision.HIGHEST
    f32 = lambda a: a.astype(jnp.float32)
    dot = lambda a, b: jnp.dot(f32(a.astype(jnp.bfloat16)), f32(b), precision=hi)

    h1 = jnp.maximum(dot(x, prep["w1t"]) + prep["b1"], 0.0)
    enc = dot(h1, prep["w2t"]) + prep["b2"]
    d0 = jnp.maximum(enc, 0.0)
    d1 = jnp.maximum(dot(d0, prep["w3t"]) + prep["b3"], 0.0)
    dec = dot(d1, prep["w4t"]) + prep["b4"]
    return enc, dec[:, :prep["in"]]


# ----------------------------------------------------------------------------- demo
if __name__ == "__main__":
    key = jax.random.PRNGKey(0)
    kx, kp = jax.random.split(key)

    batch = 8
    input_dim = 32  # -> hidden sizes 16 and 8, per the module's sizing rule

    x = jax.random.normal(kx, (batch, input_dim), jnp.float32)
    params = init_ae_params(kp, input_dim)
    prep = prepare_ae_params(params)

    enc, dec = ae_forward(x, prep)
    jax.block_until_ready((enc, dec))

    enc_ref, dec_ref = ae_reference(x, prep)
    assert enc.shape == (batch, input_dim // 4)
    assert dec.shape == (batch, input_dim)
    enc_f, dec_f = enc.astype(jnp.float32), dec.astype(jnp.float32)
    assert jnp.allclose(enc_f, enc_ref, atol=2e-2, rtol=2e-2), \
        float(jnp.max(jnp.abs(enc_f - enc_ref)))
    assert jnp.allclose(dec_f, dec_ref, atol=2e-2, rtol=2e-2), \
        float(jnp.max(jnp.abs(dec_f - dec_ref)))

    print("KERNEL_OK")
</pallas_src>

<mosaic_0001>
module attributes {stable_mosaic.version = 11 : i64} {
  func.func @ae_kernel(%arg0: i32, %arg1: memref<8x32xf32, #tpu.memory_space<vmem>>, %arg2: memref<32x128xbf16, #tpu.memory_space<vmem>>, %arg3: memref<1x128xf32, #tpu.memory_space<vmem>>, %arg4: memref<128x8xbf16, #tpu.memory_space<vmem>>, %arg5: memref<1x8xf32, #tpu.memory_space<vmem>>, %arg6: memref<8x128xbf16, #tpu.memory_space<vmem>>, %arg7: memref<1x128xf32, #tpu.memory_space<vmem>>, %arg8: memref<128x128xbf16, #tpu.memory_space<vmem>>, %arg9: memref<1x128xf32, #tpu.memory_space<vmem>>, %arg10: memref<8x8xbf16, #tpu.memory_space<vmem>>, %arg11: memref<8x128xbf16, #tpu.memory_space<vmem>>) attributes {dimension_semantics = [#tpu.dimension_semantics<parallel>], iteration_bounds = array<i64: 1>, scalar_prefetch = 0 : i64, scratch_operands = 0 : i64, tpu.core_type = #tpu.core_type<tc>, window_params = [{transform_indices = @transform_0, window_bounds = array<i64: 8, 32>}, {pipeline_mode = #tpu.pipeline_mode<synchronous>, transform_indices = @transform_1, window_bounds = array<i64: 32, 128>}, {pipeline_mode = #tpu.pipeline_mode<synchronous>, transform_indices = @transform_2, window_bounds = array<i64: 1, 128>}, {pipeline_mode = #tpu.pipeline_mode<synchronous>, transform_indices = @transform_3, window_bounds = array<i64: 128, 8>}, {pipeline_mode = #tpu.pipeline_mode<synchronous>, transform_indices = @transform_4, window_bounds = array<i64: 1, 8>}, {pipeline_mode = #tpu.pipeline_mode<synchronous>, transform_indices = @transform_5, window_bounds = array<i64: 8, 128>}, {pipeline_mode = #tpu.pipeline_mode<synchronous>, transform_indices = @transform_6, window_bounds = array<i64: 1, 128>}, {pipeline_mode = #tpu.pipeline_mode<synchronous>, transform_indices = @transform_7, window_bounds = array<i64: 128, 128>}, {pipeline_mode = #tpu.pipeline_mode<synchronous>, transform_indices = @transform_8, window_bounds = array<i64: 1, 128>}, {transform_indices = @transform_9, window_bounds = array<i64: 8, 8>}, {transform_indices = @transform_10, window_bounds = array<i64: 8, 128>}]} {
    %c0 = arith.constant 0 : index
    %c0_0 = arith.constant 0 : index
    %0 = vector.load %arg1[%c0, %c0_0] : memref<8x32xf32, #tpu.memory_space<vmem>>, vector<8x32xf32>
    %1 = arith.truncf %0 : vector<8x32xf32> to vector<8x32xbf16>
    %c0_1 = arith.constant 0 : index
    %c0_2 = arith.constant 0 : index
    %2 = vector.load %arg2[%c0_1, %c0_2] : memref<32x128xbf16, #tpu.memory_space<vmem>>, vector<32x128xbf16>
    %cst = arith.constant dense<0.000000e+00> : vector<8x128xf32>
    %3 = tpu.matmul %1, %2, %cst {dimension_numbers = #tpu.dot_dimension_numbers<[1], [0], [0], [1], [0, 0, 1, 1], [], []>} : vector<8x32xbf16>, vector<32x128xbf16>, vector<8x128xf32> -> vector<8x128xf32>
    %c0_3 = arith.constant 0 : index
    %c0_4 = arith.constant 0 : index
    %4 = vector.load %arg3[%c0_3, %c0_4] : memref<1x128xf32, #tpu.memory_space<vmem>>, vector<1x128xf32>
    %5 = vector.broadcast %4 : vector<1x128xf32> to vector<8x128xf32>
    %6 = arith.addf %3, %5 : vector<8x128xf32>
    %cst_5 = arith.constant 0.000000e+00 : f32
    %7 = vector.broadcast %cst_5 : f32 to vector<8x128xf32>
    %8 = arith.maximumf %6, %7 : vector<8x128xf32>
    %9 = arith.truncf %8 : vector<8x128xf32> to vector<8x128xbf16>
    %c0_6 = arith.constant 0 : index
    %c0_7 = arith.constant 0 : index
    %10 = vector.load %arg4[%c0_6, %c0_7] : memref<128x8xbf16, #tpu.memory_space<vmem>>, vector<128x8xbf16>
    %cst_8 = arith.constant dense<0.000000e+00> : vector<8x8xf32>
    %11 = tpu.matmul %9, %10, %cst_8 {dimension_numbers = #tpu.dot_dimension_numbers<[1], [0], [0], [1], [0, 0, 1, 1], [], []>} : vector<8x128xbf16>, vector<128x8xbf16>, vector<8x8xf32> -> vector<8x8xf32>
    %c0_9 = arith.constant 0 : index
    %c0_10 = arith.constant 0 : index
    %12 = vector.load %arg5[%c0_9, %c0_10] : memref<1x8xf32, #tpu.memory_space<vmem>>, vector<1x8xf32>
    %13 = vector.broadcast %12 : vector<1x8xf32> to vector<8x8xf32>
    %14 = arith.addf %11, %13 : vector<8x8xf32>
    %15 = arith.truncf %14 : vector<8x8xf32> to vector<8x8xbf16>
    %c0_11 = arith.constant 0 : index
    %c0_12 = arith.constant 0 : index
    %16 = vector.load %arg10[%c0_11, %c0_12] : memref<8x8xbf16, #tpu.memory_space<vmem>>, vector<8x8xbf16>
    tpu.vector_store %arg10[%c0_11, %c0_12], %15 {strides = array<i32>} : memref<8x8xbf16, #tpu.memory_space<vmem>>, vector<8x8xbf16>,
    %cst_13 = arith.constant 0.000000e+00 : f32
    %17 = vector.broadcast %cst_13 : f32 to vector<8x8xf32>
    %18 = arith.maximumf %14, %17 : vector<8x8xf32>
    %19 = arith.truncf %18 : vector<8x8xf32> to vector<8x8xbf16>
    %c0_14 = arith.constant 0 : index
    %c0_15 = arith.constant 0 : index
    %20 = vector.load %arg6[%c0_14, %c0_15] : memref<8x128xbf16, #tpu.memory_space<vmem>>, vector<8x128xbf16>
    %cst_16 = arith.constant dense<0.000000e+00> : vector<8x128xf32>
    %21 = tpu.matmul %19, %20, %cst_16 {dimension_numbers = #tpu.dot_dimension_numbers<[1], [0], [0], [1], [0, 0, 1, 1], [], []>} : vector<8x8xbf16>, vector<8x128xbf16>, vector<8x128xf32> -> vector<8x128xf32>
    %c0_17 = arith.constant 0 : index
    %c0_18 = arith.constant 0 : index
    %22 = vector.load %arg7[%c0_17, %c0_18] : memref<1x128xf32, #tpu.memory_space<vmem>>, vector<1x128xf32>
    %23 = vector.broadcast %22 : vector<1x128xf32> to vector<8x128xf32>
    %24 = arith.addf %21, %23 : vector<8x128xf32>
    %cst_19 = arith.constant 0.000000e+00 : f32
    %25 = vector.broadcast %cst_19 : f32 to vector<8x128xf32>
    %26 = arith.maximumf %24, %25 : vector<8x128xf32>
    %27 = arith.truncf %26 : vector<8x128xf32> to vector<8x128xbf16>
    %c0_20 = arith.constant 0 : index
    %c0_21 = arith.constant 0 : index
    %28 = vector.load %arg8[%c0_20, %c0_21] : memref<128x128xbf16, #tpu.memory_space<vmem>>, vector<128x128xbf16>
    %cst_22 = arith.constant dense<0.000000e+00> : vector<8x128xf32>
    %29 = tpu.matmul %27, %28, %cst_22 {dimension_numbers = #tpu.dot_dimension_numbers<[1], [0], [0], [1], [0, 0, 1, 1], [], []>} : vector<8x128xbf16>, vector<128x128xbf16>, vector<8x128xf32> -> vector<8x128xf32>
    %c0_23 = arith.constant 0 : index
    %c0_24 = arith.constant 0 : index
    %30 = vector.load %arg9[%c0_23, %c0_24] : memref<1x128xf32, #tpu.memory_space<vmem>>, vector<1x128xf32>
    %31 = vector.broadcast %30 : vector<1x128xf32> to vector<8x128xf32>
    %32 = arith.addf %29, %31 : vector<8x128xf32>
    %33 = arith.truncf %32 : vector<8x128xf32> to vector<8x128xbf16>
    %c0_25 = arith.constant 0 : index
    %c0_26 = arith.constant 0 : index
    %34 = vector.load %arg11[%c0_25, %c0_26] : memref<8x128xbf16, #tpu.memory_space<vmem>>, vector<8x128xbf16>
    tpu.vector_store %arg11[%c0_25, %c0_26], %33 {strides = array<i32>} : memref<8x128xbf16, #tpu.memory_space<vmem>>, vector<8x128xbf16>,
    return
  }
  func.func @transform_0(%arg0: i32) -> (i32, i32) {
    %c0_i32 = arith.constant 0 : i32
    %c0_i32_0 = arith.constant 0 : i32
    return %arg0, %c0_i32 : i32, i32
  }
  func.func @transform_1(%arg0: i32) -> (i32, i32) {
    %c0_i32 = arith.constant 0 : i32
    %c0_i32_0 = arith.constant 0 : i32
    %c0_i32_1 = arith.constant 0 : i32
    return %c0_i32, %c0_i32_0 : i32, i32
  }
  func.func @transform_2(%arg0: i32) -> (i32, i32) {
    %c0_i32 = arith.constant 0 : i32
    %c0_i32_0 = arith.constant 0 : i32
    %c0_i32_1 = arith.constant 0 : i32
    return %c0_i32, %c0_i32_0 : i32, i32
  }
  func.func @transform_3(%arg0: i32) -> (i32, i32) {
    %c0_i32 = arith.constant 0 : i32
    %c0_i32_0 = arith.constant 0 : i32
    %c0_i32_1 = arith.constant 0 : i32
    return %c0_i32, %c0_i32_0 : i32, i32
  }
  func.func @transform_4(%arg0: i32) -> (i32, i32) {
    %c0_i32 = arith.constant 0 : i32
    %c0_i32_0 = arith.constant 0 : i32
    %c0_i32_1 = arith.constant 0 : i32
    return %c0_i32, %c0_i32_0 : i32, i32
  }
  func.func @transform_5(%arg0: i32) -> (i32, i32) {
    %c0_i32 = arith.constant 0 : i32
    %c0_i32_0 = arith.constant 0 : i32
    %c0_i32_1 = arith.constant 0 : i32
    return %c0_i32, %c0_i32_0 : i32, i32
  }
  func.func @transform_6(%arg0: i32) -> (i32, i32) {
    %c0_i32 = arith.constant 0 : i32
    %c0_i32_0 = arith.constant 0 : i32
    %c0_i32_1 = arith.constant 0 : i32
    return %c0_i32, %c0_i32_0 : i32, i32
  }
  func.func @transform_7(%arg0: i32) -> (i32, i32) {
    %c0_i32 = arith.constant 0 : i32
    %c0_i32_0 = arith.constant 0 : i32
    %c0_i32_1 = arith.constant 0 : i32
    return %c0_i32, %c0_i32_0 : i32, i32
  }
  func.func @transform_8(%arg0: i32) -> (i32, i32) {
    %c0_i32 = arith.constant 0 : i32
    %c0_i32_0 = arith.constant 0 : i32
    %c0_i32_1 = arith.constant 0 : i32
    return %c0_i32, %c0_i32_0 : i32, i32
  }
  func.func @transform_9(%arg0: i32) -> (i32, i32) {
    %c0_i32 = arith.constant 0 : i32
    %c0_i32_0 = arith.constant 0 : i32
    return %arg0, %c0_i32 : i32, i32
  }
  func.func @transform_10(%arg0: i32) -> (i32, i32) {
    %c0_i32 = arith.constant 0 : i32
    %c0_i32_0 = arith.constant 0 : i32
    return %arg0, %c0_i32 : i32, i32
  }
}

</mosaic_0001>

<bundles_post_ra>
// kernel: tpu_custom_call.1
= control target key start
LH: loop header
LB: loop body
LE: loop exit
PB: predicated region body
PF: predicated region fallthrough
CT: control target
= control target key end

     0   :  { %16 = vsyncpa [#allocation3], 0  ;;  %s931_s0 = inlined_call_operand.hbm [shape: f32[8,32], index: 0, kind: input, shape index: {}]   ;;  %s932_s1 = inlined_call_operand.vmem [shape: bf16[32,128], index: 1, kind: input, shape index: {}]   ;;  %s933_s2 = inlined_call_operand.hbm [shape: f32[1,128], index: 2, kind: input, shape index: {}]   ;;  %s934_s3 = inlined_call_operand.vmem [shape: bf16[128,8], index: 3, kind: input, shape index: {}]   ;;  %s935_s4 = inlined_call_operand.hbm [shape: f32[1,8], index: 4, kind: input, shape index: {}]   ;;  %s936_s5 = inlined_call_operand.hbm [shape: bf16[8,128], index: 5, kind: input, shape index: {}]   ;;  %s937_s6 = inlined_call_operand.hbm [shape: f32[1,128], index: 6, kind: input, shape index: {}]   ;;  %s938_s7 = inlined_call_operand.vmem [shape: bf16[128,128], index: 7, kind: input, shape index: {}]   ;;  %s939_s8 = inlined_call_operand.vmem [shape: f32[1,128], index: 8, kind: input, shape index: {}]   ;;  %s940_s9 = inlined_call_operand.hbm [shape: bf16[8,8], index: 9, kind: output, shape index: {0}]   ;;  %s941_s10 = inlined_call_operand.hbm [shape: bf16[8,128], index: 10, kind: output, shape index: {1}]  }
   0x1   :  { %17 = vsyncpa [#allocation6], 0 }
   0x2   :  { %18 = vsyncpa [#allocation9], 0 }
   0x3   :  { %19 = vsyncpa [#allocation4], 0 }
   0x4   :  { %20 = vsyncpa [#allocation13], 0  ;;  %s762_s13 = smov [#allocation5]   ;;  %s763_s15 = smov [#allocation8]  }
   0x5   :  { %s39_s14 = sshll.u32 %s762_s13, 4  ;;  %s61_s16 = sshll.u32 %s763_s15, 4  ;;  %s40_s14 = int_to_ptr.vmem [resolvable:$true] %s39_s14  ;;  %s62_s16 = int_to_ptr.vmem [resolvable:$true] %s61_s16 }
   0x6   :  { %s620_s17 = scalar_lea.vmem %s40_s14, 16  ;;  %s624_s18 = scalar_lea.vmem %s40_s14, 32 }
   0x7   :  { %p621_p0 = scmp.ne.s32.totalorder %s40_s14, %s620_s17  ;;  %p625_p1 = scmp.lt.s32.totalorder %s40_s14, %s40_s14 }
   0x8   :  { %p626_p2 = scmp.lt.s32.totalorder %s624_s18, %s620_s17 }
   0xa   :  { %p627_p3 = por %p626_p2, %p625_p1 }
   0xc   :  { %p628_p4 = pnand %p627_p3, %p621_p0 }
   0xe   :  { %631 = shalt.err (!%p628_p4)
}
   0xf   :  { %42 = dma.hbm_to_vmem [thread:$0]  %s933_s2, 16, %s40_s14, [#allocation6]  }
  0x10   :  { %s640_s21 = scalar_lea.vmem %s62_s16, 64  ;;  %p645_p6 = scmp.lt.s32.totalorder %s62_s16, %s62_s16 }
  0x11   :  { %p641_p5 = scmp.ne.s32.totalorder %s62_s16, %s640_s21  ;;  %p646_p7 = scmp.lt.s32.totalorder %s640_s21, %s640_s21 }
  0x13   :  { %p647_p8 = por %p646_p7, %p645_p6 }
  0x15   :  { %p648_p9 = pnand %p647_p8, %p641_p5 }
  0x17   :  { %651 = shalt.err (!%p648_p9)
}
  0x18   :  { %64 = dma.hbm_to_vmem [thread:$0]  %s936_s5, 64, %s62_s16, [#allocation9]  }
  0x19   :  { %s764_s24 = smov [#allocation2]   ;;  %s765_s26 = smov [#allocation7]  }
  0x1a   :  { %s27_s25 = sshll.u32 %s764_s24, 4  ;;  %s51_s27 = sshll.u32 %s765_s26, 4  ;;  %s28_s25 = int_to_ptr.vmem [resolvable:$true] %s27_s25  ;;  %s52_s27 = int_to_ptr.vmem [resolvable:$true] %s51_s27 }
  0x1b   :  { %s660_s28 = scalar_lea.vmem %s28_s25, 128  ;;  %p665_p11 = scmp.lt.s32.totalorder %s28_s25, %s28_s25 }
  0x1c   :  { %p661_p10 = scmp.ne.s32.totalorder %s28_s25, %s660_s28  ;;  %p666_p12 = scmp.lt.s32.totalorder %s660_s28, %s660_s28 }
  0x1e   :  { %p667_p13 = por %p666_p12, %p665_p11 }
  0x20   :  { %p668_p0 = pnand %p667_p13, %p661_p10 }
  0x22   :  { %671 = shalt.err (!%p668_p0)
}
  0x23   :  { %30 = dma.hbm_to_vmem [thread:$0]  %s931_s0, 128, %s28_s25, [#allocation3]  }
  0x24   :  { %s680_s30 = scalar_lea.vmem %s52_s27, 16  ;;  %s684_s5 = scalar_lea.vmem %s52_s27, 32 }
  0x25   :  { %p681_p1 = scmp.ne.s32.totalorder %s52_s27, %s680_s30  ;;  %p685_p2 = scmp.lt.s32.totalorder %s52_s27, %s52_s27 }
  0x26   :  { %p686_p3 = scmp.lt.s32.totalorder %s684_s5, %s680_s30 }
  0x28   :  { %p687_p4 = por %p686_p3, %p685_p2 }
  0x2a   :  { %p688_p5 = pnand %p687_p4, %p681_p1 }
  0x2c   :  { %691 = shalt.err (!%p688_p5)
}
  0x2d   :  { %54 = dma.hbm_to_vmem [thread:$0]  %s935_s4, 16, %s52_s27, [#allocation6]  }
  0x2e   :  { %s766_s13 = smov [#allocation10]  }
  0x2f   :  { %s71_s14 = sshll.u32 %s766_s13, 4  ;;  %s72_s14 = int_to_ptr.vmem [resolvable:$true] %s71_s14 }
  0x30   :  { %s700_s15 = scalar_lea.vmem %s72_s14, 16  ;;  %s704_s16 = scalar_lea.vmem %s72_s14, 32 }
  0x31   :  { %p701_p6 = scmp.ne.s32.totalorder %s72_s14, %s700_s15  ;;  %p705_p7 = scmp.lt.s32.totalorder %s72_s14, %s72_s14 }
  0x32   :  { %p706_p8 = scmp.lt.s32.totalorder %s704_s16, %s700_s15 }
  0x34   :  { %p707_p9 = por %p706_p8, %p705_p7 }
  0x36   :  { %p708_p10 = pnand %p707_p9, %p701_p6 }
  0x38   :  { %711 = shalt.err (!%p708_p10)
}
  0x39   :  { %74 = dma.hbm_to_vmem [thread:$0]  %s937_s6, 16, %s72_s14, [#allocation9]  }
  0x3a   :  { %752 = dma.done.wait [#allocation3], 128  }
  0x3b   :  { %753 = vsyncadd [#allocation3], 4294967168 }
  0x3c   :  { %754 = dma.done.wait [#allocation6], 32  }
  0x3d   :  { %755 = vsyncadd [#allocation6], 4294967264 }
  0x3e   :  { %756 = dma.done.wait [#allocation9], 80  }
  0x3f   :  { %757 = vsyncadd [#allocation9], 4294967216  ;;  %v767_v0 = vmov 0.0   ;;  %vm768_vm0 = vmmov 0   ;;  %v594_v1 = vld [vmem:[%s932_s1 + $0x8] sm:$0xff]   ;;  %v595_v2 = vld [vmem:[%s932_s1] sm:$0xff]  }
  0x40   :  { %531 = vmatprep.subr.bf16.mxu1 %v767_v0  ;;  %535 = vmatprep.mubr.msk.bf16.mxu1 %vm768_vm0, %v767_v0  ;;  %v95_v3 = vld [vmem:[#allocation2] sm:$0xff]  ;;  %vm120_vm1 = vcmask 261120   ;;  %v596_v5 = vld [vmem:[%s934_s3 + $0x38] sm:$0xff]   ;;  %v597_v6 = vld [vmem:[%s934_s3 + $0x30] sm:$0xff]   ;;  %vm294_vm2 = vcmask 1043456   ;;  %vm278_vm3 = vcmask 60416  }
  0x41   :  { %559 = vmatprep.subr.bf16.mxu0 %v767_v0  ;;  %561 = vmatprep.mubr.msk.bf16.mxu0 %vm768_vm0, %v767_v0  ;;  %v96_v4 = vpack.c.bf16 %v95_v3, %v95_v3  ;;  %v598_v7 = vld [vmem:[%s934_s3 + $0x28] sm:$0xff]   ;;  %v599_v8 = vld [vmem:[%s934_s3 + $0x20] sm:$0xff]   ;;  %v600_v9 = vld [vmem:[%s934_s3 + $0x18] sm:$0xff]   ;;  %vm290_vm4 = vcmask 64512   ;;  %s769_s24 = smov [#allocation11]  }
  0x42   :  { %532 = vmatpush3.bf16.msra.mxu1 %v594_v1  ;;  %v601_v10 = vld [vmem:[%s934_s3 + $0x10] sm:$0xff]   ;;  %v602_v11 = vld [vmem:[%s934_s3 + $0x8] sm:$0xff]   ;;  %v603_v12 = vld [vmem:[%s934_s3] sm:$0xff]   ;;  %s459_s25 = sshll.u32 %s769_s24, 4  ;;  %s460_s25 = int_to_ptr.vmem [resolvable:$true] %s459_s25 }
  0x43   :  { %533 = vmatprep.subr.bf16.mxu1 %v767_v0  ;;  %v484_v13 = vld [vmem:[#allocation5] ss:$0 sm:$0xff]  ;;  %v282_v21 = vld [vmem:[#allocation8] sm:$0xf]  ;;  %v488_v23 = vld [vmem:[#allocation7] ss:$0 sm:$0xff]  ;;  %p717_p12 = scmp.lt.s32.totalorder %s460_s25, %s460_s25 }
  0x44   :  { %v296_v22 = vsel %vm294_vm2, %v282_v21, 0  ;;  %v604_v30 = vld [vmem:[%s938_s7 + $0x38] sm:$0xff]   ;;  %v605_v33 = vld [vmem:[%s938_s7 + $0x30] sm:$0xff]   ;;  %v606_v34 = vld [vmem:[%s938_s7 + $0x28] sm:$0xff]   ;;  %s712_s26 = scalar_lea.vmem %s460_s25, 64 }
  0x45   :  { %560 = vmatpush3.bf16.msra.mxu0 %v296_v22  ;;  %v607_v35 = vld [vmem:[%s938_s7 + $0x20] sm:$0xff]   ;;  %v608_v36 = vld [vmem:[%s938_s7 + $0x18] sm:$0xff]   ;;  %v609_v37 = vld [vmem:[%s938_s7 + $0x10] sm:$0xff]   ;;  %p713_p11 = scmp.ne.s32.totalorder %s460_s25, %s712_s26  ;;  %p718_p13 = scmp.lt.s32.totalorder %s712_s26, %s712_s26 }
  0x46   :  { %534 = vmatpush3.bf16.msra.mxu1 %v595_v2  ;;  %565 = vmatprep.subr.bf16.mxu0 %v767_v0  ;;  %v610_v38 = vld [vmem:[%s938_s7 + $0x8] sm:$0xff]   ;;  %v611_v39 = vld [vmem:[%s938_s7] sm:$0xff]   ;;  %v497_v40 = vld [vmem:[#allocation10] ss:$0 sm:$0xff] }
  0x47   :  { %539 = vmatprep.subr.bf16.mxu1 %v767_v0  ;;  %p719_p0 = por %p718_p13, %p717_p12 }
  0x49   :  { %536 = vmatmul.mubr.msk.bf16.vlgmr.msra.gmra.mxu1 %vm120_vm1, %v96_v4  ;;  %p720_p1 = pnand %p719_p0, %p713_p11 }
  0x4a   :  { %540 = vmatpush3.bf16.msra.mxu1 %v596_v5  ;;  %555 = vmatprep.mubr.msk.bf16.mxu1 %vm768_vm0, %v767_v0 }
  0x4b   :  { %541 = vmatprep.subr.bf16.mxu1 %v767_v0 }
  0x4e   :  { %542 = vmatpush3.bf16.msra.mxu1 %v597_v6 }
  0x4f   :  { %543 = vmatprep.subr.bf16.mxu1 %v767_v0 }
  0x52   :  { %544 = vmatpush3.bf16.msra.mxu1 %v598_v7 }
  0x53   :  { %545 = vmatprep.subr.bf16.mxu1 %v767_v0 }
  0x56   :  { %546 = vmatpush3.bf16.msra.mxu1 %v599_v8 }
  0x57   :  { %547 = vmatprep.subr.bf16.mxu1 %v767_v0 }
  0x5a   :  { %548 = vmatpush3.bf16.msra.mxu1 %v600_v9 }
  0x5b   :  { %549 = vmatprep.subr.bf16.mxu1 %v767_v0 }
  0x5e   :  { %550 = vmatpush3.bf16.msra.mxu1 %v601_v10 }
  0x5f   :  { %551 = vmatprep.subr.bf16.mxu1 %v767_v0 }
  0x62   :  { %552 = vmatpush3.bf16.msra.mxu1 %v602_v11 }
  0x63   :  { %553 = vmatprep.subr.bf16.mxu1 %v767_v0 }
  0x66   :  { %554 = vmatpush3.bf16.msra.mxu1 %v603_v12 }
 0x109   :  { %v158_v14 = vpop.f32.mrf.mxu1 }
 0x10a   :  { %v159_v15 = vadd.f32 %v484_v13, %v158_v14 }
 0x10b   :  { %v537_v16 = vpop.f32.mrf.mxu1 }
 0x10c   :  { %v164_v17 = vmax.f32 %v159_v15, 0.0 }
 0x10d   :  { %v161_v18 = vpop.f32.mrf.mxu1 }
 0x10e   :  { %v165_v19 = vpack.c.bf16 %v164_v17, %v164_v17 }
 0x10f   :  { %v538_v20 = vpop.f32.mrf.mxu1 }
 0x110   :  { %556 = vmatmul.mubr.bf16.vlgmr.msra.gmra.mxu1 %v165_v19 }
 0x1d0   :  { %v271_v24 = vpop.f32.mrf.mxu1 }
 0x1d1   :  { %v272_v25 = vadd.f32 %v488_v23, %v271_v24 }
 0x1d2   :  { %v557_v26 = vpop.f32.mrf.mxu1 }
 0x1d3   :  { %v277_v27 = vpack.c.bf16 %v272_v25, %v272_v25  ;;  %v280_v28 = vmax.f32 %v272_v25, 0.0 }
 0x1d4   :  { %v274_v29 = vpop.f32.mrf.mxu1 }
 0x1d5   :  { %v281_v31 = vpack.c.bf16 %v280_v28, %v280_v28  ;;  %279 = vst.msk [vmem:[#allocation11] sm:$0xf] %vm278_vm3, %v277_v27 }
 0x1d6   :  { %v558_v32 = vpop.f32.mrf.mxu1 }
 0x1d7   :  { %562 = vmatmul.mubr.msk.bf16.vlgmr.msra.gmra.mxu0 %vm290_vm4, %v281_v31 }
 0x1d8   :  { %566 = vmatpush3.bf16.msra.mxu0 %v604_v30  ;;  %581 = vmatprep.mubr.msk.bf16.mxu0 %vm768_vm0, %v767_v0 }
 0x1d9   :  { %567 = vmatprep.subr.bf16.mxu0 %v767_v0 }
 0x1dc   :  { %568 = vmatpush3.bf16.msra.mxu0 %v605_v33 }
 0x1dd   :  { %569 = vmatprep.subr.bf16.mxu0 %v767_v0 }
 0x1e0   :  { %570 = vmatpush3.bf16.msra.mxu0 %v606_v34 }
 0x1e1   :  { %571 = vmatprep.subr.bf16.mxu0 %v767_v0 }
 0x1e4   :  { %572 = vmatpush3.bf16.msra.mxu0 %v607_v35 }
 0x1e5   :  { %573 = vmatprep.subr.bf16.mxu0 %v767_v0 }
 0x1e8   :  { %574 = vmatpush3.bf16.msra.mxu0 %v608_v36 }
 0x1e9   :  { %575 = vmatprep.subr.bf16.mxu0 %v767_v0 }
 0x1ec   :  { %576 = vmatpush3.bf16.msra.mxu0 %v609_v37 }
 0x1ed   :  { %577 = vmatprep.subr.bf16.mxu0 %v767_v0 }
 0x1f0   :  { %578 = vmatpush3.bf16.msra.mxu0 %v610_v38 }
 0x1f1   :  { %579 = vmatprep.subr.bf16.mxu0 %v767_v0 }
 0x1f4   :  { %580 = vmatpush3.bf16.msra.mxu0 %v611_v39 }
 0x297   :  { %v332_v41 = vpop.f32.mrf.mxu0 }
 0x298   :  { %v333_v42 = vadd.f32 %v497_v40, %v332_v41 }
 0x299   :  { %v563_v43 = vpop.f32.mrf.mxu0 }
 0x29a   :  { %v338_v44 = vmax.f32 %v333_v42, 0.0 }
 0x29b   :  { %v335_v45 = vpop.f32.mrf.mxu0 }
 0x29c   :  { %v339_v46 = vpack.c.bf16 %v338_v44, %v338_v44 }
 0x29d   :  { %v564_v47 = vpop.f32.mrf.mxu0 }
 0x29e   :  { %582 = vmatmul.mubr.bf16.vlgmr.msra.gmra.mxu0 %v339_v46 }
 0x29f   :  { %723 = shalt.err (!%p720_p1)
}
 0x2a0   :  { %462 = dma.vmem_to_hbm [thread:$0]  %s460_s25, 64, %s940_s9, [#allocation4]   ;;  %v499_v48 = vld [vmem:[%s939_s8] ss:$0 sm:$0xff] }
 0x2a1   :  { %s770_s29 = smov [#allocation12]  }
 0x2a2   :  { %s469_s30 = sshll.u32 %s770_s29, 4  ;;  %s470_s30 = int_to_ptr.vmem [resolvable:$true] %s469_s30 }
 0x2a3   :  { %s732_s5 = scalar_lea.vmem %s470_s30, 64  ;;  %p737_p3 = scmp.lt.s32.totalorder %s470_s30, %s470_s30 }
 0x2a4   :  { %p733_p2 = scmp.ne.s32.totalorder %s470_s30, %s732_s5  ;;  %p738_p4 = scmp.lt.s32.totalorder %s732_s5, %s732_s5 }
 0x2a6   :  { %p739_p5 = por %p738_p4, %p737_p3 }
 0x2a8   :  { %p740_p6 = pnand %p739_p5, %p733_p2 }
 0x35e   :  { %v445_v49 = vpop.f32.mrf.mxu0 }
 0x35f   :  { %v446_v50 = vadd.f32 %v499_v48, %v445_v49 }
 0x360   :  { %v583_v51 = vpop.f32.mrf.mxu0 }
 0x361   :  { %v451_v52 = vpack.c.bf16 %v446_v50, %v446_v50 }
 0x362   :  { %v448_v53 = vpop.f32.mrf.mxu0 }
 0x363   :  { %452 = vst [vmem:[#allocation12] sm:$0xf] %v451_v52 }
 0x364   :  { %v584_v54 = vpop.f32.mrf.mxu0 }
 0x365   :  { %743 = shalt.err (!%p740_p6)
}
 0x366   :  { %472 = dma.vmem_to_hbm [thread:$0]  %s470_s30, 64, %s941_s10, [#allocation13]  }
 0x367   :  { %758 = dma.done.wait [#allocation4], 64  }
 0x368   :  { %759 = vsyncadd [#allocation4], 4294967232 }
 0x369   :  { %760 = dma.done.wait [#allocation13], 64  }
 0x36a   :  { %761 = vsyncadd [#allocation13], 4294967232 }
 0x36b   :  { %479 = vsyncpa [#allocation3], 1 }
 0x36c   :  { %480 = vsyncpa [#allocation6], 1 }
 0x36d   :  { %481 = vsyncpa [#allocation9], 1 }
 0x36e   :  { %482 = vsyncpa [#allocation4], 1 }
 0x36f   :  { %483 = vsyncpa [#allocation13], 1 }

</bundles_post_ra>
